<compile_context>
chip_gen: v7x
topology: tpu7x:2x2x1
jax: 0.10.0
libtpu: 0.0.40
codegen_flags: <defaults>
</compile_context>

<pallas_src>
import functools

import jax
import jax.numpy as jnp
from jax import lax
from jax.experimental import pallas as pl
from jax.experimental.pallas import tpu as pltpu


def _round_up(a, m):
    return (a + m - 1) // m * m


def encoder_kernel(x_ref, w_ref, b_ref, pos_ref, o_ref, *, n_batch):
    # x_ref: (tm, F)  w_ref: (F, E)  b_ref: (1, E)  pos_ref: (ts, E)  o_ref: (tm, E)
    # with tm == ts * n_batch.  Accumulation stays f32 on the MXU.
    # (If a bf16 MXU feed is ever wanted, cast x/w *here* — the VPU cast rides
    #  free slack; the kernel is HBM-bound so it is not done by default.)
    h = jnp.dot(x_ref[...], w_ref[...], preferred_element_type=jnp.float32)
    h = jnp.maximum(h + b_ref[...].astype(jnp.float32), 0.0)       # Linear + ReLU

    ts = pos_ref.shape[0]
    tm = o_ref.shape[0]
    pos = pos_ref[...].astype(jnp.float32)
    if n_batch == 1:
        p = pos
    else:
        # Expand pos rows over the batch: p[r] = pos[r // n_batch].
        # Implemented as a 0/1 selection matmul (no sublane-merging reshape
        # needed; MXU/VPU cost is negligible and hidden under the DMA-bound
        # pipeline).
        r_idx = lax.broadcasted_iota(jnp.int32, (tm, ts), 0)
        s_idx = lax.broadcasted_iota(jnp.int32, (tm, ts), 1)
        hit = jnp.logical_and(r_idx >= s_idx * n_batch,
                              r_idx < (s_idx + 1) * n_batch)
        sel = jnp.where(hit, 1.0, 0.0).astype(jnp.float32)
        p = jnp.dot(sel, pos, preferred_element_type=jnp.float32)
    o_ref[...] = (h + p).astype(o_ref.dtype)


def _build_pos_table(hop_w, rel_w, grp_w, n_hops, n_relations, n_classes):
    """(S, E) table: hop + relation + group embeddings (cheap JAX glue)."""
    n_groups = 2 * n_classes + 1
    base_seq_len = n_hops * n_groups + 2
    hop_rows = jnp.concatenate(
        [hop_w[0:1], hop_w[0:1]]
        + [jnp.tile(hop_w[i:i + 1], (n_groups, 1)) for i in range(1, n_hops + 1)],
        axis=0)                                            # (base_seq_len, E)
    hop_full = jnp.tile(hop_rows, (n_relations, 1))        # (S, E)
    rel_full = jnp.repeat(rel_w, base_seq_len, axis=0)     # (S, E)
    grp_rows = jnp.concatenate(
        [grp_w[-1:], grp_w[-1:], jnp.tile(grp_w, (n_hops, 1))], axis=0)
    grp_full = jnp.tile(grp_rows, (n_relations, 1))        # (S, E)
    return hop_full + rel_full + grp_full                  # (S, E)


def custom_encoder_forward(x, w, b, hop_w, rel_w, grp_w,
                           n_hops, n_relations, n_classes,
                           row_block_max=1024, target_cores=1):
    """x: (S, N, F); w: (F, E) (= nn.Linear weight transposed); b: (E,).

    row_block_max : rough budget of collapsed rows per grid step (raise toward
                    2048 on v7x's faster HBM).
    target_cores  : 1 on v5e/v6e; 2 on v7x so both TensorCores get blocks.
    """
    S, N, F = x.shape
    E = w.shape[1]
    n_groups = 2 * n_classes + 1
    base_seq_len = n_hops * n_groups + 2
    assert S == n_relations * base_seq_len, "seq length inconsistent with config"
    out_dtype = x.dtype

    # Positional table stays at (S, E); expansion over N happens in-kernel.
    pos = _build_pos_table(hop_w, rel_w, grp_w,
                           n_hops, n_relations, n_classes).astype(jnp.float32)

    M = S * N
    x2 = x.reshape(M, F)          # contiguous -> free metadata reshape, no pad
    b2 = b.reshape(1, E)

    # ---- choose ts = sequence rows per block (legal: ts == S or ts % 8 == 0) ----
    ts = max(1, row_block_max // max(N, 1))
    if ts >= S or S <= 8:
        ts = S
    else:
        ts = max(8, (ts // 8) * 8)
    # v7x (2 TCs): ensure >= target_cores parallel blocks; on v5e/v6e
    # (target_cores=1) a single block is kept when the problem fits.
    if target_cores > 1 and S > 8 and pl.cdiv(S, ts) < target_cores:
        ts = min(ts, max(8, _round_up(pl.cdiv(S, target_cores), 8)))
    tm = ts * N                   # collapsed rows per block (tm % N == 0)
    grid_m = pl.cdiv(M, tm)       # ragged last block handled by Pallas
    # NOTE: for extremely large N (tm*E*4 >> VMEM) an extra N-blocking grid
    # axis would be needed; not required for typical batch sizes.

    # Raise the scoped-VMEM limit only if the double-buffered working set
    # would not fit v5e's 16 MiB default.
    blk_bytes = 4 * (tm * F + tm * E + ts * E)
    vmem_need = 2 * blk_bytes + 4 * (F * E + E)
    if vmem_need > 12 * (1 << 20):
        cparams = pltpu.CompilerParams(
            dimension_semantics=("parallel",),
            vmem_limit_bytes=min(vmem_need + (4 << 20), 64 << 20))
    else:
        cparams = pltpu.CompilerParams(dimension_semantics=("parallel",))

    out = pl.pallas_call(
        functools.partial(encoder_kernel, n_batch=N),
        out_shape=jax.ShapeDtypeStruct((M, E), out_dtype),
        grid_spec=pltpu.PrefetchScalarGridSpec(
            num_scalar_prefetch=0,
            grid=(grid_m,),
            in_specs=[
                pl.BlockSpec((tm, F), lambda i: (i, 0)),   # x rows for this tile
                pl.BlockSpec((F, E), lambda i: (0, 0)),    # W (resident)
                pl.BlockSpec((1, E), lambda i: (0, 0)),    # bias (resident)
                pl.BlockSpec((ts, E), lambda i: (i, 0)),   # un-expanded pos rows
            ],
            out_specs=pl.BlockSpec((tm, E), lambda i: (i, 0)),
        ),
        compiler_params=cparams,
    )(x2, w, b2, pos)

    return out.reshape(S, N, E)


def reference_forward(x, w, b, hop_w, rel_w, grp_w, n_hops, n_relations, n_classes):
    """Pure-JAX line-by-line mirror of the PyTorch forward (eval mode).

    Deliberately built with torch-equivalent ops (cat / repeat-as-tile / view)
    rather than the kernel-side _build_pos_table, so the two paths are
    constructed independently.
    """
    emb_dim = hop_w.shape[1]
    n_groups = 2 * n_classes + 1
    base_seq_len = n_hops * n_groups + 2
    hop_list = [hop_w[0][None, :], hop_w[0][None, :]]
    for i in range(1, n_hops + 1):
        hop_list.append(jnp.tile(hop_w[i][None, :], (n_groups, 1)))   # .repeat(n_groups, 1)
    hop_emb = jnp.tile(jnp.concatenate(hop_list, axis=0), (n_relations, 1))
    rel_emb = jnp.tile(rel_w, (1, base_seq_len)).reshape(-1, emb_dim)  # .repeat(1,L).view(-1,E)
    grp_emb = jnp.concatenate([grp_w[-1][None, :], grp_w[-1][None, :],
                               jnp.tile(grp_w, (n_hops, 1))], axis=0)
    grp_emb = jnp.tile(grp_emb, (n_relations, 1))
    out = jax.nn.relu(jnp.einsum("snf,fe->sne", x, w) + b[None, None, :])  # MLP
    out = out + hop_emb[:, None, :] + rel_emb[:, None, :] + grp_emb[:, None, :]
    return out                                                         # dropout = identity (eval)


if __name__ == "__main__":
    # Small config consistent with the module (emb_dim default = 128 -> lane-dense).
    feat_dim, emb_dim = 32, 128
    n_classes, n_hops, n_relations = 2, 2, 3
    n_groups = 2 * n_classes + 1                 # 5
    base_seq_len = n_hops * n_groups + 2         # 12
    S = n_relations * base_seq_len               # 36
    N = 4                                        # batch -> M = 144 rows

    key = jax.random.PRNGKey(0)
    k_x, k_w, k_b, k_hop, k_rel, k_grp = jax.random.split(key, 6)

    x = jax.random.normal(k_x, (S, N, feat_dim), dtype=jnp.float32)
    # nn.Linear(feat_dim, emb_dim): weight (E, F); kernel consumes W^T = (F, E)
    w_t = jax.random.normal(k_w, (feat_dim, emb_dim), dtype=jnp.float32) * 0.1
    b = jax.random.normal(k_b, (emb_dim,), dtype=jnp.float32) * 0.1
    # nn.Embedding weights (N(0,1), like torch default)
    hop_w = jax.random.normal(k_hop, (n_hops + 1, emb_dim), dtype=jnp.float32)
    rel_w = jax.random.normal(k_rel, (n_relations, emb_dim), dtype=jnp.float32)
    grp_w = jax.random.normal(k_grp, (n_groups, emb_dim), dtype=jnp.float32)

    out = custom_encoder_forward(x, w_t, b, hop_w, rel_w, grp_w,
                                 n_hops, n_relations, n_classes)
    out = jax.block_until_ready(out)

    ref = reference_forward(x, w_t, b, hop_w, rel_w, grp_w,
                            n_hops, n_relations, n_classes)
    assert out.shape == (S, N, emb_dim)
    err = float(jnp.max(jnp.abs(out - ref)))
    assert jnp.allclose(out, ref, rtol=1e-2, atol=1e-2), f"max abs err = {err}"

    print("KERNEL_OK")
</pallas_src>

<mosaic_0001>
module attributes {stable_mosaic.version = 11 : i64} {
  func.func @encoder_kernel(%arg0: i32, %arg1: memref<144x32xf32, #tpu.memory_space<vmem>>, %arg2: memref<32x128xf32, #tpu.memory_space<vmem>>, %arg3: memref<1x128xf32, #tpu.memory_space<vmem>>, %arg4: memref<36x128xf32, #tpu.memory_space<vmem>>, %arg5: memref<144x128xf32, #tpu.memory_space<vmem>>) attributes {dimension_semantics = [#tpu.dimension_semantics<parallel>], iteration_bounds = array<i64: 1>, scalar_prefetch = 0 : i64, scratch_operands = 0 : i64, tpu.core_type = #tpu.core_type<tc>, window_params = [{transform_indices = @transform_0, window_bounds = array<i64: 144, 32>}, {pipeline_mode = #tpu.pipeline_mode<synchronous>, transform_indices = @transform_1, window_bounds = array<i64: 32, 128>}, {pipeline_mode = #tpu.pipeline_mode<synchronous>, transform_indices = @transform_2, window_bounds = array<i64: 1, 128>}, {transform_indices = @transform_3, window_bounds = array<i64: 36, 128>}, {transform_indices = @transform_4, window_bounds = array<i64: 144, 128>}]} {
    %c0 = arith.constant 0 : index
    %c0_0 = arith.constant 0 : index
    %0 = vector.load %arg1[%c0, %c0_0] : memref<144x32xf32, #tpu.memory_space<vmem>>, vector<144x32xf32>
    %c0_1 = arith.constant 0 : index
    %c0_2 = arith.constant 0 : index
    %1 = vector.load %arg2[%c0_1, %c0_2] : memref<32x128xf32, #tpu.memory_space<vmem>>, vector<32x128xf32>
    %cst = arith.constant dense<0.000000e+00> : vector<144x128xf32>
    %2 = tpu.matmul %0, %1, %cst {dimension_numbers = #tpu.dot_dimension_numbers<[1], [0], [0], [1], [0, 0, 1, 1], [], []>} : vector<144x32xf32>, vector<32x128xf32>, vector<144x128xf32> -> vector<144x128xf32>
    %c0_3 = arith.constant 0 : index
    %c0_4 = arith.constant 0 : index
    %3 = vector.load %arg3[%c0_3, %c0_4] : memref<1x128xf32, #tpu.memory_space<vmem>>, vector<1x128xf32>
    %4 = vector.broadcast %3 : vector<1x128xf32> to vector<144x128xf32>
    %5 = arith.addf %2, %4 : vector<144x128xf32>
    %cst_5 = arith.constant 0.000000e+00 : f32
    %6 = vector.broadcast %cst_5 : f32 to vector<144x128xf32>
    %7 = arith.maximumf %5, %6 : vector<144x128xf32>
    %c0_6 = arith.constant 0 : index
    %c0_7 = arith.constant 0 : index
    %8 = vector.load %arg4[%c0_6, %c0_7] : memref<36x128xf32, #tpu.memory_space<vmem>>, vector<36x128xf32>
    %9 = tpu.iota {dimensions = array<i32: 0>} : vector<144x36xi32>
    %10 = tpu.iota {dimensions = array<i32: 1>} : vector<144x36xi32>
    %c4_i32 = arith.constant 4 : i32
    %11 = vector.broadcast %c4_i32 : i32 to vector<144x36xi32>
    %12 = arith.muli %10, %11 : vector<144x36xi32>
    %13 = arith.cmpi sge, %9, %12 : vector<144x36xi32>
    %c1_i32 = arith.constant 1 : i32
    %14 = vector.broadcast %c1_i32 : i32 to vector<144x36xi32>
    %15 = arith.addi %10, %14 : vector<144x36xi32>
    %c4_i32_8 = arith.constant 4 : i32
    %16 = vector.broadcast %c4_i32_8 : i32 to vector<144x36xi32>
    %17 = arith.muli %15, %16 : vector<144x36xi32>
    %18 = arith.cmpi slt, %9, %17 : vector<144x36xi32>
    %19 = arith.andi %13, %18 : vector<144x36xi1>
    %cst_9 = arith.constant 1.000000e+00 : f32
    %cst_10 = arith.constant 0.000000e+00 : f32
    %20 = vector.broadcast %cst_9 : f32 to vector<144x36xf32>
    %21 = vector.broadcast %cst_10 : f32 to vector<144x36xf32>
    %22 = arith.select %19, %20, %21 : vector<144x36xi1>, vector<144x36xf32>
    %cst_11 = arith.constant dense<0.000000e+00> : vector<144x128xf32>
    %23 = tpu.matmul %22, %8, %cst_11 {dimension_numbers = #tpu.dot_dimension_numbers<[1], [0], [0], [1], [0, 0, 1, 1], [], []>} : vector<144x36xf32>, vector<36x128xf32>, vector<144x128xf32> -> vector<144x128xf32>
    %24 = arith.addf %7, %23 : vector<144x128xf32>
    %c0_12 = arith.constant 0 : index
    %c0_13 = arith.constant 0 : index
    %25 = vector.load %arg5[%c0_12, %c0_13] : memref<144x128xf32, #tpu.memory_space<vmem>>, vector<144x128xf32>
    tpu.vector_store %arg5[%c0_12, %c0_13], %24 {strides = array<i32>} : memref<144x128xf32, #tpu.memory_space<vmem>>, vector<144x128xf32>,
    return
  }
  func.func @transform_0(%arg0: i32) -> (i32, i32) {
    %c0_i32 = arith.constant 0 : i32
    %c0_i32_0 = arith.constant 0 : i32
    return %arg0, %c0_i32 : i32, i32
  }
  func.func @transform_1(%arg0: i32) -> (i32, i32) {
    %c0_i32 = arith.constant 0 : i32
    %c0_i32_0 = arith.constant 0 : i32
    %c0_i32_1 = arith.constant 0 : i32
    return %c0_i32, %c0_i32_0 : i32, i32
  }
  func.func @transform_2(%arg0: i32) -> (i32, i32) {
    %c0_i32 = arith.constant 0 : i32
    %c0_i32_0 = arith.constant 0 : i32
    %c0_i32_1 = arith.constant 0 : i32
    return %c0_i32, %c0_i32_0 : i32, i32
  }
  func.func @transform_3(%arg0: i32) -> (i32, i32) {
    %c0_i32 = arith.constant 0 : i32
    %c0_i32_0 = arith.constant 0 : i32
    return %arg0, %c0_i32 : i32, i32
  }
  func.func @transform_4(%arg0: i32) -> (i32, i32) {
    %c0_i32 = arith.constant 0 : i32
    %c0_i32_0 = arith.constant 0 : i32
    return %arg0, %c0_i32 : i32, i32
  }
}

</mosaic_0001>

<bundles_post_ra>
// kernel: tpu_custom_call.1
= control target key start
LH: loop header
LB: loop body
LE: loop exit
PB: predicated region body
PF: predicated region fallthrough
CT: control target
= control target key end

     0   :  { %vm47_vm0 = vcmask 261120   ;;  %v280_v3 = vlaneseq  ;;  %vm431_vm2 = vcmask 1043456   ;;  %vm376_vm3 = vcmask 293888   ;;  %s1113_s0 = inlined_call_operand.vmem [shape: f32[144,32], index: 0, kind: input, shape index: {}]   ;;  %s1114_s1 = inlined_call_operand.vmem [shape: f32[32,128], index: 1, kind: input, shape index: {}]   ;;  %s1115_s2 = inlined_call_operand.vmem [shape: f32[1,128], index: 2, kind: input, shape index: {}]   ;;  %s1116_s3 = inlined_call_operand.vmem [shape: f32[36,128], index: 3, kind: input, shape index: {}]   ;;  %s1117_s4 = inlined_call_operand.hbm [shape: f32[144,128], index: 4, kind: output, shape index: {}]  }
   0x1   :  { %v36_v0 = vld [vmem:[%s1114_s1] sm:$0xff]  ;;  %v37_v1 = vld [vmem:[%s1114_s1 + $0x8] sm:$0xff]  ;;  %v38_v6 = vld [vmem:[%s1114_s1 + $0x10] sm:$0xff]  ;;  %v841_v27 = vmov 0.0  }
   0x2   :  { %v275_v2 = vld [vmem:[%s1116_s3] sm:$0xff]  ;;  %v797_v4 = vpack.c.bf16 %v37_v1, %v36_v0  ;;  %v276_v5 = vld [vmem:[%s1116_s3 + $0x8] sm:$0xff]  ;;  %v39_v7 = vld [vmem:[%s1114_s1 + $0x18] sm:$0xff]  ;;  %v897_v13 = vshrl.u32 %v280_v3, 7  ;;  %v300_v14 = vand.u32 127, %v280_v3 }
   0x3   :  { %v805_v8 = vpack.c.bf16 %v276_v5, %v275_v2  ;;  %v801_v9 = vpack.c.bf16 %v39_v7, %v38_v6  ;;  %v277_v10 = vld [vmem:[%s1116_s3 + $0x10] sm:$0xff]  ;;  %v278_v11 = vld [vmem:[%s1116_s3 + $0x18] sm:$0xff]  ;;  %v18_v12 = vld [vmem:[%s1113_s0] sm:$0xff] }
   0x4   :  { %798 = vmatprep.subr.bf16.mxu0 %v797_v4  ;;  %v809_v15 = vpack.c.bf16 %v278_v11, %v277_v10  ;;  %733 = vmatprep.mubr.msk.f32.mxu0 %vm47_vm0, %v18_v12  ;;  %v900_v16 = vmul.u32 4, %v300_v14  ;;  %v320_v17 = vadd.s32 1, %v300_v14  ;;  %v282_v18 = vadd.s32 8, %v897_v13  ;;  %v279_v23 = vld [vmem:[%s1116_s3 + $0x20] sm:$0xf]  ;;  %v19_v24 = vld [vmem:[%s1113_s0 + $0x8] sm:$0xff] }
   0x5   :  { %800 = vmatpush3.bf16.msra.mxu0 %v797_v4  ;;  %806 = vmatprep.subr.bf16.mxu1 %v805_v8  ;;  %v283_v19 = vadd.s32 16, %v897_v13  ;;  %v284_v20 = vadd.s32 24, %v897_v13  ;;  %v285_v22 = vadd.s32 32, %v897_v13  ;;  %v20_v25 = vld [vmem:[%s1113_s0 + $0x10] sm:$0xff]  ;;  %v286_v26 = vadd.s32 40, %v897_v13  ;;  %v21_v31 = vld [vmem:[%s1113_s0 + $0x18] sm:$0xff] }
   0x6   :  { %808 = vmatpush3.bf16.msra.mxu1 %v805_v8  ;;  %802 = vmatprep.subr.bf16.mxu0 %v801_v9  ;;  %vm302_vm1 = vcmp.ge.s32.totalorder %v897_v13, %v900_v16  ;;  %v907_v21 = vmul.u32 4, %v320_v17  ;;  %vm303_vm4 = vcmp.ge.s32.totalorder %v282_v18, %v900_v16  ;;  %v287_v29 = vadd.s32 48, %v897_v13  ;;  %v22_v33 = vld [vmem:[%s1113_s0 + $0x20] sm:$0xff]  ;;  %v23_v37 = vld [vmem:[%s1113_s0 + $0x28] sm:$0xff]  ;;  %v24_v39 = vld [vmem:[%s1113_s0 + $0x30] sm:$0xff] }
   0x7   :  { %810 = vmatprep.subr.bf16.mxu1 %v809_v15  ;;  %vm304_vm7 = vcmp.ge.s32.totalorder %v283_v19, %v900_v16  ;;  %vm305_vm10 = vcmp.ge.s32.totalorder %v284_v20, %v900_v16  ;;  %vm306_vm13 = vcmp.ge.s32.totalorder %v285_v22, %v900_v16  ;;  %v288_v34 = vadd.s32 56, %v897_v13  ;;  %v25_v43 = vld [vmem:[%s1113_s0 + $0x38] sm:$0xff]  ;;  %v26_v45 = vld [vmem:[%s1113_s0 + $0x40] sm:$0xff]  ;;  %v27_v49 = vld [vmem:[%s1113_s0 + $0x48] sm:$0xff] }
   0x8   :  { %vm322_vm5 = vcmp.lt.s32.totalorder %v897_v13, %v907_v21  ;;  %vm323_vm6 = vcmp.lt.s32.totalorder %v282_v18, %v907_v21  ;;  %vm324_vm8 = vcmp.lt.s32.totalorder %v283_v19, %v907_v21  ;;  %vm325_vm11 = vcmp.lt.s32.totalorder %v284_v20, %v907_v21  ;;  %v28_v51 = vld [vmem:[%s1113_s0 + $0x50] sm:$0xff] }
   0x9   :  { %804 = vmatpush3.bf16.msra.mxu0 %v801_v9  ;;  %vm340_vm9 = vmand %vm302_vm1, %vm322_vm5  ;;  %vm326_vm14 = vcmp.lt.s32.totalorder %v285_v22, %v907_v21  ;;  %vm307_vm5 = vcmp.ge.s32.totalorder %v286_v26, %v900_v16  ;;  %v289_v35 = vadd.s32 64, %v897_v13  ;;  %v290_v40 = vadd.s32 72, %v897_v13 }
   0xa   :  { %812 = vmatpush3.bf16.msra.mxu1 %v809_v15  ;;  %v358_v28 = vsel %vm340_vm9, 1.0, %v841_v27  ;;  %vm341_vm12 = vmand %vm303_vm4, %vm323_vm6  ;;  %vm327_vm6 = vcmp.lt.s32.totalorder %v286_v26, %v907_v21  ;;  %v291_v41 = vadd.s32 80, %v897_v13  ;;  %v292_v46 = vadd.s32 88, %v897_v13 }
   0xb   :  { %768 = vmatprep.subr.msk.mxu1 %vm431_vm2, %v279_v23  ;;  %770 = vmatprep.mubr.msk.f32.mxu1 %vm376_vm3, %v358_v28  ;;  %v359_v30 = vsel %vm341_vm12, 1.0, %v841_v27  ;;  %vm342_vm15 = vmand %vm304_vm7, %vm324_vm8  ;;  %vm308_vm7 = vcmp.ge.s32.totalorder %v287_v29, %v900_v16  ;;  %vm328_vm8 = vcmp.lt.s32.totalorder %v287_v29, %v907_v21  ;;  %vm310_vm12 = vcmp.ge.s32.totalorder %v289_v35, %v900_v16 }
   0xc   :  { %734 = vmatmul.mubr.msk.f32.vlgmr.msra.gmra.mrb[0].mxu0 %vm47_vm0, %v19_v24  ;;  %v360_v32 = vsel %vm342_vm15, 1.0, %v841_v27  ;;  %vm343_vm1 = vmand %vm305_vm10, %vm325_vm11  ;;  %vm309_vm10 = vcmp.ge.s32.totalorder %v288_v34, %v900_v16  ;;  %vm329_vm11 = vcmp.lt.s32.totalorder %v288_v34, %v907_v21  ;;  %v293_v47 = vadd.s32 96, %v897_v13 }
   0xd   :  { %736 = vmatprep.mubr.msk.f32.mxu0 %vm47_vm0, %v20_v25  ;;  %vm344_vm4 = vmand %vm306_vm13, %vm326_vm14  ;;  %v361_v36 = vsel %vm343_vm1, 1.0, %v841_v27  ;;  %vm330_vm13 = vcmp.lt.s32.totalorder %v289_v35, %v907_v21  ;;  %vm311_vm1 = vcmp.ge.s32.totalorder %v290_v40, %v900_v16  ;;  %v294_v52 = vadd.s32 104, %v897_v13 }
   0xe   :  { %769 = vmatpush3.msk.msra.mxu1 %vm431_vm2, %v279_v23  ;;  %v362_v38 = vsel %vm344_vm4, 1.0, %v841_v27  ;;  %vm345_vm2 = vmand %vm307_vm5, %vm327_vm6  ;;  %vm331_vm4 = vcmp.lt.s32.totalorder %v290_v40, %v907_v21  ;;  %vm312_vm5 = vcmp.ge.s32.totalorder %v291_v41, %v900_v16  ;;  %vm332_vm6 = vcmp.lt.s32.totalorder %v291_v41, %v907_v21 }
   0xf   :  { %771 = vmatmul.mubr.msk.f32.vlgmr.msra.gmra.mrb[0].mxu1 %vm376_vm3, %v359_v30  ;;  %vm346_vm9 = vmand %vm308_vm7, %vm328_vm8  ;;  %v363_v42 = vsel %vm345_vm2, 1.0, %v841_v27  ;;  %vm313_vm2 = vcmp.ge.s32.totalorder %v292_v46, %v900_v16  ;;  %v295_v53 = vadd.s32 112, %v897_v13 }
  0x10   :  { %737 = vmatmul.mubr.msk.f32.gmra.mrb[2].mxu0 %vm47_vm0, %v21_v31  ;;  %773 = vmatprep.mubr.msk.f32.mxu1 %vm376_vm3, %v360_v32  ;;  %v364_v44 = vsel %vm346_vm9, 1.0, %v841_v27  ;;  %vm347_vm14 = vmand %vm309_vm10, %vm329_vm11  ;;  %vm333_vm9 = vcmp.lt.s32.totalorder %v292_v46, %v907_v21  ;;  %vm314_vm10 = vcmp.ge.s32.totalorder %v293_v47, %v900_v16  ;;  %vm334_vm11 = vcmp.lt.s32.totalorder %v293_v47, %v907_v21 }
  0x11   :  { %739 = vmatprep.mubr.msk.f32.mxu0 %vm47_vm0, %v22_v33  ;;  %vm348_vm15 = vmand %vm310_vm12, %vm330_vm13  ;;  %v365_v48 = vsel %vm347_vm14, 1.0, %v841_v27 }
  0x12   :  { %v366_v50 = vsel %vm348_vm15, 1.0, %v841_v27  ;;  %vm349_vm7 = vmand %vm311_vm1, %vm331_vm4 }
  0x13   :  { %774 = vmatmul.mubr.msk.f32.gmra.mrb[2].mxu1 %vm376_vm3, %v361_v36  ;;  %vm350_vm8 = vmand %vm312_vm5, %vm332_vm6  ;;  %v367_v54 = vsel %vm349_vm7, 1.0, %v841_v27 }
  0x14   :  { %740 = vmatmul.mubr.msk.f32.gmra.mrb[4].mxu0 %vm47_vm0, %v23_v37  ;;  %776 = vmatprep.mubr.msk.f32.mxu1 %vm376_vm3, %v362_v38 }
  0x15   :  { %742 = vmatprep.mubr.msk.f32.mxu0 %vm47_vm0, %v24_v39 }
  0x17   :  { %777 = vmatmul.mubr.msk.f32.gmra.mrb[4].mxu1 %vm376_vm3, %v363_v42 }
  0x18   :  { %743 = vmatmul.mubr.msk.f32.gmra.mrb[6].mxu0 %vm47_vm0, %v25_v43  ;;  %779 = vmatprep.mubr.msk.f32.mxu1 %vm376_vm3, %v364_v44 }
  0x19   :  { %745 = vmatprep.mubr.msk.f32.mxu0 %vm47_vm0, %v26_v45 }
  0x1b   :  { %780 = vmatmul.mubr.msk.f32.gmra.mrb[6].mxu1 %vm376_vm3, %v365_v48 }
  0x1c   :  { %746 = vmatmul.mubr.msk.f32.gmra.mrb[8].mxu0 %vm47_vm0, %v27_v49  ;;  %782 = vmatprep.mubr.msk.f32.mxu1 %vm376_vm3, %v366_v50 }
  0x1d   :  { %9 = vsyncpa [#allocation3], 0  ;;  %748 = vmatprep.mubr.msk.f32.mxu0 %vm47_vm0, %v28_v51  ;;  %v29_v55 = vld [vmem:[%s1113_s0 + $0x58] sm:$0xff]  ;;  %v368_v56 = vsel %vm350_vm8, 1.0, %v841_v27  ;;  %v30_v57 = vld [vmem:[%s1113_s0 + $0x60] sm:$0xff]  ;;  %vm315_vm14 = vcmp.ge.s32.totalorder %v294_v52, %v900_v16  ;;  %vm335_vm15 = vcmp.lt.s32.totalorder %v294_v52, %v907_v21  ;;  %v296_v58 = vadd.s32 120, %v897_v13 }
  0x1e   :  { %vm351_vm12 = vmand %vm313_vm2, %vm333_vm9  ;;  %vm316_vm1 = vcmp.ge.s32.totalorder %v295_v53, %v900_v16  ;;  %vm336_vm4 = vcmp.lt.s32.totalorder %v295_v53, %v907_v21  ;;  %v297_v59 = vadd.s32 128, %v897_v13  ;;  %v31_v61 = vld [vmem:[%s1113_s0 + $0x68] sm:$0xff]  ;;  %v32_v63 = vld [vmem:[%s1113_s0 + $0x70] sm:$0xff]  ;;  %v298_v0 = vadd.s32 136, %v897_v13 }
  0x1f   :  { %vm352_vm13 = vmand %vm314_vm10, %vm334_vm11  ;;  %783 = vmatmul.mubr.msk.f32.gmra.mrb[8].mxu1 %vm376_vm3, %v367_v54  ;;  %v369_v60 = vsel %vm351_vm12, 1.0, %v841_v27  ;;  %vm317_vm7 = vcmp.ge.s32.totalorder %v296_v58, %v900_v16  ;;  %vm337_vm8 = vcmp.lt.s32.totalorder %v296_v58, %v907_v21  ;;  %v33_v2 = vld [vmem:[%s1113_s0 + $0x78] sm:$0xff]  ;;  %v34_v4 = vld [vmem:[%s1113_s0 + $0x80] sm:$0xff] }
  0x20   :  { %749 = vmatmul.mubr.msk.f32.gmra.mrb[10].mxu0 %vm47_vm0, %v29_v55  ;;  %785 = vmatprep.mubr.msk.f32.mxu1 %vm376_vm3, %v368_v56  ;;  %v370_v62 = vsel %vm352_vm13, 1.0, %v841_v27  ;;  %vm353_vm5 = vmand %vm315_vm14, %vm335_vm15  ;;  %vm318_vm2 = vcmp.ge.s32.totalorder %v297_v59, %v900_v16  ;;  %vm338_vm9 = vcmp.lt.s32.totalorder %v297_v59, %v907_v21  ;;  %vm319_vm12 = vcmp.ge.s32.totalorder %v298_v0, %v900_v16  ;;  %v35_v6 = vld [vmem:[%s1113_s0 + $0x88] sm:$0xff]  ;;  %v1081_v9 = vld [vmem:[%s1115_s2] ss:$0 sm:$0xff]  ;;  %s842_s0 = smov [#allocation2]  }
  0x21   :  { %751 = vmatprep.mubr.msk.f32.mxu0 %vm47_vm0, %v30_v57  ;;  %vm354_vm6 = vmand %vm316_vm1, %vm336_vm4  ;;  %v371_v1 = vsel %vm353_vm5, 1.0, %v841_v27  ;;  %vm339_vm13 = vcmp.lt.s32.totalorder %v298_v0, %v907_v21  ;;  %s631_s2 = sshll.u32 %s842_s0, 4  ;;  %s632_s2 = int_to_ptr.vmem [resolvable:$true] %s631_s2 }
  0x22   :  { %v372_v3 = vsel %vm354_vm6, 1.0, %v841_v27  ;;  %vm355_vm10 = vmand %vm317_vm7, %vm337_vm8  ;;  %s817_s15 = scalar_lea.vmem %s632_s2, 2304  ;;  %p822_p1 = scmp.lt.s32.totalorder %s632_s2, %s632_s2 }
  0x23   :  { %786 = vmatmul.mubr.msk.f32.gmra.mrb[10].mxu1 %vm376_vm3, %v369_v60  ;;  %vm356_vm11 = vmand %vm318_vm2, %vm338_vm9  ;;  %v373_v5 = vsel %vm355_vm10, 1.0, %v841_v27  ;;  %p818_p0 = scmp.ne.s32.totalorder %s632_s2, %s817_s15  ;;  %p823_p2 = scmp.lt.s32.totalorder %s817_s15, %s817_s15 }
  0x24   :  { %752 = vmatmul.mubr.msk.f32.gmra.mrb[12].mxu0 %vm47_vm0, %v31_v61  ;;  %788 = vmatprep.mubr.msk.f32.mxu1 %vm376_vm3, %v370_v62  ;;  %v374_v7 = vsel %vm356_vm11, 1.0, %v841_v27  ;;  %vm357_vm14 = vmand %vm319_vm12, %vm339_vm13 }
  0x25   :  { %754 = vmatprep.mubr.msk.f32.mxu0 %vm47_vm0, %v32_v63  ;;  %v375_v8 = vsel %vm357_vm14, 1.0, %v841_v27  ;;  %p824_p3 = por %p823_p2, %p822_p1 }
  0x27   :  { %789 = vmatmul.mubr.msk.f32.gmra.mrb[12].mxu1 %vm376_vm3, %v371_v1  ;;  %p825_p4 = pnand %p824_p3, %p818_p0 }
  0x28   :  { %755 = vmatmul.mubr.msk.f32.gmra.mrb[14].mxu0 %vm47_vm0, %v33_v2  ;;  %791 = vmatprep.mubr.msk.f32.mxu1 %vm376_vm3, %v372_v3 }
  0x29   :  { %757 = vmatprep.mubr.msk.f32.mxu0 %vm47_vm0, %v34_v4 }
  0x2b   :  { %792 = vmatmul.mubr.msk.f32.gmra.mrb[14].mxu1 %vm376_vm3, %v373_v5 }
  0x2c   :  { %758 = vmatmul.mubr.msk.f32.gmra.mrb[16].mxu0 %vm47_vm0, %v35_v6  ;;  %794 = vmatprep.mubr.msk.f32.mxu1 %vm376_vm3, %v374_v7 }
  0x2f   :  { %795 = vmatmul.mubr.msk.f32.gmra.mrb[16].mxu1 %vm376_vm3, %v375_v8 }
  0xdf   :  { %v735_v10 = vpop.f32.mrb[0].mxu0 }
  0xe0   :  { %v174_v11 = vadd.f32 %v735_v10, %v1081_v9  ;;  %v168_v12 = vpop.f32.mrb[1].mxu0 }
  0xe1   :  { %v169_v13 = vadd.f32 %v1081_v9, %v168_v12 }
  0xe2   :  { %v258_v14 = vmax.f32 %v174_v11, 0.0  ;;  %v772_v15 = vpop.f32.mrb[0].mxu1 }
  0xe3   :  { %v257_v16 = vmax.f32 %v169_v13, 0.0  ;;  %v738_v17 = vpop.f32.mrb[2].mxu0  ;;  %v501_v18 = vpop.f32.mrb[1].mxu1 }
  0xe4   :  { %v591_v19 = vadd.f32 %v772_v15, %v258_v14  ;;  %v184_v20 = vadd.f32 %v738_v17, %v1081_v9  ;;  %v178_v21 = vpop.f32.mrb[3].mxu0 }
  0xe5   :  { %v590_v22 = vadd.f32 %v501_v18, %v257_v16  ;;  %v179_v23 = vadd.f32 %v1081_v9, %v178_v21 }
  0xe6   :  { %609 = vst [vmem:[#allocation2 + $0x8] sm:$0xff] %v591_v19  ;;  %v260_v24 = vmax.f32 %v184_v20, 0.0  ;;  %v775_v25 = vpop.f32.mrb[2].mxu1 }
  0xe7   :  { %608 = vst [vmem:[#allocation2] sm:$0xff] %v590_v22  ;;  %v259_v26 = vmax.f32 %v179_v23, 0.0  ;;  %v741_v27 = vpop.f32.mrb[4].mxu0  ;;  %v511_v28 = vpop.f32.mrb[3].mxu1 }
  0xe8   :  { %v593_v29 = vadd.f32 %v775_v25, %v260_v24  ;;  %v194_v30 = vadd.f32 %v741_v27, %v1081_v9  ;;  %v188_v31 = vpop.f32.mrb[5].mxu0 }
  0xe9   :  { %v592_v32 = vadd.f32 %v511_v28, %v259_v26  ;;  %v189_v33 = vadd.f32 %v1081_v9, %v188_v31 }
  0xea   :  { %611 = vst [vmem:[#allocation2 + $0x18] sm:$0xff] %v593_v29  ;;  %v262_v34 = vmax.f32 %v194_v30, 0.0  ;;  %v778_v35 = vpop.f32.mrb[4].mxu1 }
  0xeb   :  { %610 = vst [vmem:[#allocation2 + $0x10] sm:$0xff] %v592_v32  ;;  %v261_v36 = vmax.f32 %v189_v33, 0.0  ;;  %v744_v37 = vpop.f32.mrb[6].mxu0  ;;  %v521_v38 = vpop.f32.mrb[5].mxu1 }
  0xec   :  { %v595_v39 = vadd.f32 %v778_v35, %v262_v34  ;;  %v204_v40 = vadd.f32 %v744_v37, %v1081_v9  ;;  %v198_v41 = vpop.f32.mrb[7].mxu0 }
  0xed   :  { %v594_v42 = vadd.f32 %v521_v38, %v261_v36  ;;  %v199_v43 = vadd.f32 %v1081_v9, %v198_v41 }
  0xee   :  { %613 = vst [vmem:[#allocation2 + $0x28] sm:$0xff] %v595_v39  ;;  %v264_v44 = vmax.f32 %v204_v40, 0.0  ;;  %v781_v45 = vpop.f32.mrb[6].mxu1 }
  0xef   :  { %612 = vst [vmem:[#allocation2 + $0x20] sm:$0xff] %v594_v42  ;;  %v263_v46 = vmax.f32 %v199_v43, 0.0  ;;  %v747_v47 = vpop.f32.mrb[8].mxu0  ;;  %v531_v48 = vpop.f32.mrb[7].mxu1 }
  0xf0   :  { %v597_v49 = vadd.f32 %v781_v45, %v264_v44  ;;  %v214_v50 = vadd.f32 %v747_v47, %v1081_v9  ;;  %v208_v51 = vpop.f32.mrb[9].mxu0 }
  0xf1   :  { %v596_v52 = vadd.f32 %v531_v48, %v263_v46  ;;  %v209_v53 = vadd.f32 %v1081_v9, %v208_v51 }
  0xf2   :  { %615 = vst [vmem:[#allocation2 + $0x38] sm:$0xff] %v597_v49  ;;  %v266_v54 = vmax.f32 %v214_v50, 0.0  ;;  %v784_v55 = vpop.f32.mrb[8].mxu1 }
  0xf3   :  { %614 = vst [vmem:[#allocation2 + $0x30] sm:$0xff] %v596_v52  ;;  %v265_v56 = vmax.f32 %v209_v53, 0.0  ;;  %v750_v57 = vpop.f32.mrb[10].mxu0  ;;  %v541_v58 = vpop.f32.mrb[9].mxu1 }
  0xf4   :  { %v599_v59 = vadd.f32 %v784_v55, %v266_v54  ;;  %v224_v60 = vadd.f32 %v750_v57, %v1081_v9  ;;  %v218_v61 = vpop.f32.mrb[11].mxu0 }
  0xf5   :  { %v598_v62 = vadd.f32 %v541_v58, %v265_v56  ;;  %v219_v63 = vadd.f32 %v1081_v9, %v218_v61 }
  0xf6   :  { %617 = vst [vmem:[#allocation2 + $0x48] sm:$0xff] %v599_v59  ;;  %v268_v0 = vmax.f32 %v224_v60, 0.0  ;;  %v787_v1 = vpop.f32.mrb[10].mxu1 }
  0xf7   :  { %616 = vst [vmem:[#allocation2 + $0x40] sm:$0xff] %v598_v62  ;;  %v267_v2 = vmax.f32 %v219_v63, 0.0  ;;  %v753_v3 = vpop.f32.mrb[12].mxu0  ;;  %v551_v4 = vpop.f32.mrb[11].mxu1 }
  0xf8   :  { %v601_v5 = vadd.f32 %v787_v1, %v268_v0  ;;  %v234_v6 = vadd.f32 %v753_v3, %v1081_v9  ;;  %v228_v7 = vpop.f32.mrb[13].mxu0 }
  0xf9   :  { %v600_v8 = vadd.f32 %v551_v4, %v267_v2  ;;  %v229_v10 = vadd.f32 %v1081_v9, %v228_v7 }
  0xfa   :  { %619 = vst [vmem:[#allocation2 + $0x58] sm:$0xff] %v601_v5  ;;  %v270_v11 = vmax.f32 %v234_v6, 0.0  ;;  %v790_v12 = vpop.f32.mrb[12].mxu1 }
  0xfb   :  { %618 = vst [vmem:[#allocation2 + $0x50] sm:$0xff] %v600_v8  ;;  %v269_v13 = vmax.f32 %v229_v10, 0.0  ;;  %v756_v14 = vpop.f32.mrb[14].mxu0  ;;  %v561_v15 = vpop.f32.mrb[13].mxu1 }
  0xfc   :  { %v603_v16 = vadd.f32 %v790_v12, %v270_v11  ;;  %v244_v17 = vadd.f32 %v756_v14, %v1081_v9  ;;  %v238_v18 = vpop.f32.mrb[15].mxu0 }
  0xfd   :  { %v602_v19 = vadd.f32 %v561_v15, %v269_v13  ;;  %v239_v20 = vadd.f32 %v1081_v9, %v238_v18 }
  0xfe   :  { %621 = vst [vmem:[#allocation2 + $0x68] sm:$0xff] %v603_v16  ;;  %v272_v21 = vmax.f32 %v244_v17, 0.0  ;;  %v793_v22 = vpop.f32.mrb[14].mxu1 }
  0xff   :  { %620 = vst [vmem:[#allocation2 + $0x60] sm:$0xff] %v602_v19  ;;  %v271_v23 = vmax.f32 %v239_v20, 0.0  ;;  %v759_v24 = vpop.f32.mrb[16].mxu0  ;;  %v571_v25 = vpop.f32.mrb[15].mxu1 }
 0x100   :  { %v605_v26 = vadd.f32 %v793_v22, %v272_v21  ;;  %v254_v27 = vadd.f32 %v759_v24, %v1081_v9  ;;  %v248_v28 = vpop.f32.mrb[17].mxu0 }
 0x101   :  { %v604_v29 = vadd.f32 %v571_v25, %v271_v23  ;;  %v249_v30 = vadd.f32 %v1081_v9, %v248_v28 }
 0x102   :  { %623 = vst [vmem:[#allocation2 + $0x78] sm:$0xff] %v605_v26  ;;  %v274_v31 = vmax.f32 %v254_v27, 0.0  ;;  %v796_v32 = vpop.f32.mrb[16].mxu1 }
 0x103   :  { %622 = vst [vmem:[#allocation2 + $0x70] sm:$0xff] %v604_v29  ;;  %v273_v33 = vmax.f32 %v249_v30, 0.0  ;;  %v581_v34 = vpop.f32.mrb[17].mxu1 }
 0x104   :  { %v607_v35 = vadd.f32 %v796_v32, %v274_v31 }
 0x105   :  { %v606_v36 = vadd.f32 %v581_v34, %v273_v33 }
 0x106   :  { %625 = vst [vmem:[#allocation2 + $0x88] sm:$0xff] %v607_v35 }
 0x107   :  { %624 = vst [vmem:[#allocation2 + $0x80] sm:$0xff] %v606_v36 }
 0x108   :  { %828 = shalt.err (!%p825_p4)
}
 0x109   :  { %s829_s18 = scalar_lea.hbm %s1117_s4, 2304 }
 0x10a   :  { %p830_p5 = scmp.ne.s32.totalorder %s1117_s4, %s829_s18  ;;  %p833_p6 = scmp.lt.u32.totalorder %s829_s18, %s1117_s4 }
 0x10c   :  { %p835_p7 = pnand %p833_p6, %p830_p5 }
 0x10e   :  { %838 = shalt.err (!%p835_p7)
}
 0x10f   :  { %s843_s23 = smov 128   ;;  %s844_s24 = smov 8  }
 0x110   :  { %637 = dma.vmem_to_hbm [thread:$0]  %s632_s2, 2304, %s1117_s4, [#allocation3], %s843_s23, %s843_s23, %s844_s24  }
 0x111   :  { %839 = dma.done.wait [#allocation3], 2304  }
 0x112   :  { %840 = vsyncadd [#allocation3], 4294964992 }
 0x113   :  { %641 = vsyncpa [#allocation3], 1 }

</bundles_post_ra>
